<compile_context>
chip_gen: v7x
topology: tpu7x:2x2x1
jax: 0.10.0
libtpu: 0.0.40
codegen_flags: <defaults>
</compile_context>

<pallas_src>
import jax
import jax.numpy as jnp
from jax.experimental import pallas as pl
from jax.experimental.pallas import tpu as pltpu


def classifier_kernel(u_ref, v_ref, w1_ref, b1_ref, w2_ref, b2_ref, o_ref):
    u = u_ref[...]
    v = v_ref[...]

    # Build the virtual 4D feature block in VMEM/registers (never hits HBM).
    feat = jnp.concatenate([u, v, u * v, jnp.abs(u - v)], axis=1)

    # Layer 1: one fused K=4D MXU contraction + bias + tanh.
    h = jnp.dot(feat, w1_ref[...], preferred_element_type=jnp.float32)
    h += b1_ref[...]                 # (1, H) broadcasts over the batch tile
    h = jnp.tanh(h)

    # Layer 2: lane-padded logits (C_pad = multiple of 128).
    out = jnp.dot(h.astype(w2_ref.dtype), w2_ref[...],
                  preferred_element_type=jnp.float32)
    out += b2_ref[...]               # (1, C_pad)

    o_ref[...] = out.astype(o_ref.dtype)


def classifier_forward(u, v, w1, b1, w2, b2, tile_b=None):
    """u, v: [B, D]; w1: [4D, H]; b1: [H]; w2: [H, C]; b2: [C] -> [B, C]."""
    B, D = u.shape
    H = w1.shape[1]
    C = w2.shape[1]

    # ---- lane-pad the classifier output dimension to a multiple of 128 ----
    C_pad = max(128, pl.cdiv(C, 128) * 128)
    w2_p = jnp.zeros((H, C_pad), dtype=w2.dtype).at[:, :C].set(w2)
    b2_p = jnp.zeros((1, C_pad), dtype=b2.dtype).at[0, :C].set(b2)
    b1_2d = b1.reshape(1, H)

    # ---- batch tiling / padding ----
    if tile_b is None:
        tile_b = 128 if B >= 128 else ((B + 7) // 8) * 8
    B_pad = pl.cdiv(B, tile_b) * tile_b
    if B_pad != B:
        pad = B_pad - B
        u = jnp.pad(u, ((0, pad), (0, 0)))
        v = jnp.pad(v, ((0, pad), (0, 0)))

    grid = (B_pad // tile_b,)

    out_padded = pl.pallas_call(
        classifier_kernel,
        out_shape=jax.ShapeDtypeStruct((B_pad, C_pad), jnp.float32),
        grid=grid,
        in_specs=[
            pl.BlockSpec((tile_b, D), lambda i: (i, 0)),   # u  (tiled over batch)
            pl.BlockSpec((tile_b, D), lambda i: (i, 0)),   # v  (tiled over batch)
            pl.BlockSpec((4 * D, H), lambda i: (0, 0)),    # w1 (VMEM-resident)
            pl.BlockSpec((1, H),     lambda i: (0, 0)),    # b1
            pl.BlockSpec((H, C_pad), lambda i: (0, 0)),    # w2 (lane-padded)
            pl.BlockSpec((1, C_pad), lambda i: (0, 0)),    # b2 (lane-padded)
        ],
        out_specs=pl.BlockSpec((tile_b, C_pad), lambda i: (i, 0)),
        compiler_params=pltpu.CompilerParams(
            dimension_semantics=("parallel",),
        ),
    )(u, v, w1, b1_2d, w2_p, b2_p)

    # Strip batch / class padding (padding columns of W2/b2 are zero, so
    # the first C columns are exactly the true logits).
    return out_padded[:B, :C]


def reference_forward(u, v, w1, b1, w2, b2):
    concat = jnp.concatenate([u, v, u * v, jnp.abs(u - v)], axis=1)
    h = jnp.tanh(concat @ w1 + b1)
    return h @ w2 + b2


if __name__ == "__main__":
    # Small shapes consistent with the module: input_dim=128, hidden_dim=128,
    # num_classes=3, batch=8.
    B, D, H, C = 8, 128, 128, 3

    key = jax.random.PRNGKey(0)
    ku, kv, kw1, kb1, kw2, kb2 = jax.random.split(key, 6)

    u = jax.random.normal(ku, (B, D), dtype=jnp.float32)
    v = jax.random.normal(kv, (B, D), dtype=jnp.float32)

    # Deterministic parameter init (uniform, scaled like torch.nn.Linear).
    lim1 = 1.0 / jnp.sqrt(4.0 * D)
    w1 = jax.random.uniform(kw1, (4 * D, H), jnp.float32, -lim1, lim1)
    b1 = jax.random.uniform(kb1, (H,), jnp.float32, -lim1, lim1)
    lim2 = 1.0 / jnp.sqrt(1.0 * H)
    w2 = jax.random.uniform(kw2, (H, C), jnp.float32, -lim2, lim2)
    b2 = jax.random.uniform(kb2, (C,), jnp.float32, -lim2, lim2)

    out = classifier_forward(u, v, w1, b1, w2, b2)
    out = jax.block_until_ready(out)

    ref = reference_forward(u, v, w1, b1, w2, b2)
    assert out.shape == (B, C)
    assert jnp.allclose(out, ref, atol=1e-4, rtol=1e-4)

    print("KERNEL_OK")
</pallas_src>

<mosaic_0001>
module attributes {stable_mosaic.version = 11 : i64} {
  func.func @classifier_kernel(%arg0: i32, %arg1: memref<8x128xf32, #tpu.memory_space<vmem>>, %arg2: memref<8x128xf32, #tpu.memory_space<vmem>>, %arg3: memref<512x128xf32, #tpu.memory_space<vmem>>, %arg4: memref<1x128xf32, #tpu.memory_space<vmem>>, %arg5: memref<128x128xf32, #tpu.memory_space<vmem>>, %arg6: memref<1x128xf32, #tpu.memory_space<vmem>>, %arg7: memref<8x128xf32, #tpu.memory_space<vmem>>) attributes {dimension_semantics = [#tpu.dimension_semantics<parallel>], iteration_bounds = array<i64: 1>, scalar_prefetch = 0 : i64, scratch_operands = 0 : i64, tpu.core_type = #tpu.core_type<tc>, window_params = [{transform_indices = @transform_0, window_bounds = array<i64: 8, 128>}, {transform_indices = @transform_1, window_bounds = array<i64: 8, 128>}, {pipeline_mode = #tpu.pipeline_mode<synchronous>, transform_indices = @transform_2, window_bounds = array<i64: 512, 128>}, {pipeline_mode = #tpu.pipeline_mode<synchronous>, transform_indices = @transform_3, window_bounds = array<i64: 1, 128>}, {pipeline_mode = #tpu.pipeline_mode<synchronous>, transform_indices = @transform_4, window_bounds = array<i64: 128, 128>}, {pipeline_mode = #tpu.pipeline_mode<synchronous>, transform_indices = @transform_5, window_bounds = array<i64: 1, 128>}, {transform_indices = @transform_6, window_bounds = array<i64: 8, 128>}]} {
    %c0 = arith.constant 0 : index
    %c0_0 = arith.constant 0 : index
    %0 = vector.load %arg1[%c0, %c0_0] : memref<8x128xf32, #tpu.memory_space<vmem>>, vector<8x128xf32>
    %c0_1 = arith.constant 0 : index
    %c0_2 = arith.constant 0 : index
    %1 = vector.load %arg2[%c0_1, %c0_2] : memref<8x128xf32, #tpu.memory_space<vmem>>, vector<8x128xf32>
    %2 = arith.mulf %0, %1 : vector<8x128xf32>
    %3 = arith.subf %0, %1 : vector<8x128xf32>
    %4 = math.absf %3 : vector<8x128xf32>
    %5 = tpu.concatenate %0, %1, %2, %4 in 1 : vector<8x128xf32>, vector<8x128xf32>, vector<8x128xf32>, vector<8x128xf32> -> vector<8x512xf32>
    %c0_3 = arith.constant 0 : index
    %c0_4 = arith.constant 0 : index
    %6 = vector.load %arg3[%c0_3, %c0_4] : memref<512x128xf32, #tpu.memory_space<vmem>>, vector<512x128xf32>
    %cst = arith.constant dense<0.000000e+00> : vector<8x128xf32>
    %7 = tpu.matmul %5, %6, %cst {dimension_numbers = #tpu.dot_dimension_numbers<[1], [0], [0], [1], [0, 0, 1, 1], [], []>} : vector<8x512xf32>, vector<512x128xf32>, vector<8x128xf32> -> vector<8x128xf32>
    %c0_5 = arith.constant 0 : index
    %c0_6 = arith.constant 0 : index
    %8 = vector.load %arg4[%c0_5, %c0_6] : memref<1x128xf32, #tpu.memory_space<vmem>>, vector<1x128xf32>
    %9 = vector.broadcast %8 : vector<1x128xf32> to vector<8x128xf32>
    %10 = arith.addf %7, %9 : vector<8x128xf32>
    %11 = math.tanh %10 : vector<8x128xf32>
    %c0_7 = arith.constant 0 : index
    %c0_8 = arith.constant 0 : index
    %12 = vector.load %arg5[%c0_7, %c0_8] : memref<128x128xf32, #tpu.memory_space<vmem>>, vector<128x128xf32>
    %cst_9 = arith.constant dense<0.000000e+00> : vector<8x128xf32>
    %13 = tpu.matmul %11, %12, %cst_9 {dimension_numbers = #tpu.dot_dimension_numbers<[1], [0], [0], [1], [0, 0, 1, 1], [], []>} : vector<8x128xf32>, vector<128x128xf32>, vector<8x128xf32> -> vector<8x128xf32>
    %c0_10 = arith.constant 0 : index
    %c0_11 = arith.constant 0 : index
    %14 = vector.load %arg6[%c0_10, %c0_11] : memref<1x128xf32, #tpu.memory_space<vmem>>, vector<1x128xf32>
    %15 = vector.broadcast %14 : vector<1x128xf32> to vector<8x128xf32>
    %16 = arith.addf %13, %15 : vector<8x128xf32>
    %c0_12 = arith.constant 0 : index
    %c0_13 = arith.constant 0 : index
    %17 = vector.load %arg7[%c0_12, %c0_13] : memref<8x128xf32, #tpu.memory_space<vmem>>, vector<8x128xf32>
    tpu.vector_store %arg7[%c0_12, %c0_13], %16 {strides = array<i32>} : memref<8x128xf32, #tpu.memory_space<vmem>>, vector<8x128xf32>,
    return
  }
  func.func @transform_0(%arg0: i32) -> (i32, i32) {
    %c0_i32 = arith.constant 0 : i32
    %c0_i32_0 = arith.constant 0 : i32
    return %arg0, %c0_i32 : i32, i32
  }
  func.func @transform_1(%arg0: i32) -> (i32, i32) {
    %c0_i32 = arith.constant 0 : i32
    %c0_i32_0 = arith.constant 0 : i32
    return %arg0, %c0_i32 : i32, i32
  }
  func.func @transform_2(%arg0: i32) -> (i32, i32) {
    %c0_i32 = arith.constant 0 : i32
    %c0_i32_0 = arith.constant 0 : i32
    %c0_i32_1 = arith.constant 0 : i32
    return %c0_i32, %c0_i32_0 : i32, i32
  }
  func.func @transform_3(%arg0: i32) -> (i32, i32) {
    %c0_i32 = arith.constant 0 : i32
    %c0_i32_0 = arith.constant 0 : i32
    %c0_i32_1 = arith.constant 0 : i32
    return %c0_i32, %c0_i32_0 : i32, i32
  }
  func.func @transform_4(%arg0: i32) -> (i32, i32) {
    %c0_i32 = arith.constant 0 : i32
    %c0_i32_0 = arith.constant 0 : i32
    %c0_i32_1 = arith.constant 0 : i32
    return %c0_i32, %c0_i32_0 : i32, i32
  }
  func.func @transform_5(%arg0: i32) -> (i32, i32) {
    %c0_i32 = arith.constant 0 : i32
    %c0_i32_0 = arith.constant 0 : i32
    %c0_i32_1 = arith.constant 0 : i32
    return %c0_i32, %c0_i32_0 : i32, i32
  }
  func.func @transform_6(%arg0: i32) -> (i32, i32) {
    %c0_i32 = arith.constant 0 : i32
    %c0_i32_0 = arith.constant 0 : i32
    return %arg0, %c0_i32 : i32, i32
  }
}

</mosaic_0001>

<bundles_post_ra>
// kernel: tpu_custom_call.1
= control target key start
LH: loop header
LB: loop body
LE: loop exit
PB: predicated region body
PF: predicated region fallthrough
CT: control target
= control target key end

     0   :  { %11 = vsyncpa [#allocation3], 0  ;;  %s856_s0 = inlined_call_operand.hbm [shape: f32[8,128], index: 0, kind: input, shape index: {}]   ;;  %s857_s1 = inlined_call_operand.hbm [shape: f32[8,128], index: 1, kind: input, shape index: {}]   ;;  %s858_s2 = inlined_call_operand.hbm [shape: f32[512,128], index: 2, kind: input, shape index: {}]   ;;  %s859_s3 = inlined_call_operand.vmem [shape: f32[1,128], index: 3, kind: input, shape index: {}]   ;;  %s860_s4 = inlined_call_operand.hbm [shape: f32[128,128], index: 4, kind: input, shape index: {}]   ;;  %s861_s5 = inlined_call_operand.vmem [shape: f32[1,128], index: 5, kind: input, shape index: {}]   ;;  %s862_s6 = inlined_call_operand.hbm [shape: f32[8,128], index: 6, kind: output, shape index: {}]  }
   0x1   :  { %12 = vsyncpa [#allocation6], 0 }
   0x2   :  { %13 = vsyncpa [#allocation9], 0 }
   0x3   :  { %14 = vsyncpa [#allocation4], 0  ;;  %s745_s21 = smov [#allocation5]   ;;  %s746_s23 = smov [#allocation2]  }
   0x4   :  { %s31_s22 = sshll.u32 %s745_s21, 4  ;;  %s21_s24 = sshll.u32 %s746_s23, 4  ;;  %s32_s22 = int_to_ptr.vmem [resolvable:$true] %s31_s22  ;;  %s22_s24 = int_to_ptr.vmem [resolvable:$true] %s21_s24 }
   0x5   :  { %s627_s27 = scalar_lea.hbm %s857_s1, 128 }
   0x6   :  { %p628_p0 = scmp.ne.s32.totalorder %s857_s1, %s627_s27  ;;  %p631_p1 = scmp.lt.u32.totalorder %s627_s27, %s857_s1 }
   0x8   :  { %p633_p2 = pnand %p631_p1, %p628_p0 }
   0xa   :  { %636 = shalt.err (!%p633_p2)
}
   0xb   :  { %s637_s8 = scalar_lea.vmem %s32_s22, 128  ;;  %p642_p4 = scmp.lt.s32.totalorder %s32_s22, %s32_s22 }
   0xc   :  { %p638_p3 = scmp.ne.s32.totalorder %s32_s22, %s637_s8  ;;  %p643_p5 = scmp.lt.s32.totalorder %s637_s8, %s637_s8 }
   0xe   :  { %p644_p6 = por %p643_p5, %p642_p4 }
  0x10   :  { %p645_p7 = pnand %p644_p6, %p638_p3 }
  0x12   :  { %648 = shalt.err (!%p645_p7)
}
  0x13   :  { %34 = dma.hbm_to_vmem [thread:$0]  %s857_s1, 128, %s32_s22, [#allocation6]  }
  0x14   :  { %s649_s13 = scalar_lea.hbm %s856_s0, 128 }
  0x15   :  { %p650_p8 = scmp.ne.s32.totalorder %s856_s0, %s649_s13  ;;  %p653_p9 = scmp.lt.u32.totalorder %s649_s13, %s856_s0 }
  0x17   :  { %p655_p10 = pnand %p653_p9, %p650_p8 }
  0x19   :  { %658 = shalt.err (!%p655_p10)
}
  0x1a   :  { %s659_s18 = scalar_lea.vmem %s22_s24, 128  ;;  %p664_p12 = scmp.lt.s32.totalorder %s22_s24, %s22_s24 }
  0x1b   :  { %p660_p11 = scmp.ne.s32.totalorder %s22_s24, %s659_s18  ;;  %p665_p13 = scmp.lt.s32.totalorder %s659_s18, %s659_s18 }
  0x1d   :  { %p666_p0 = por %p665_p13, %p664_p12 }
  0x1f   :  { %p667_p1 = pnand %p666_p0, %p660_p11 }
  0x21   :  { %670 = shalt.err (!%p667_p1)
}
  0x22   :  { %24 = dma.hbm_to_vmem [thread:$0]  %s856_s0, 128, %s22_s24, [#allocation3]  }
  0x23   :  { %s747_s20 = smov [#allocation7]   ;;  %s671_s25 = scalar_lea.hbm %s858_s2, 8192 }
  0x24   :  { %s40_s21 = sshll.u32 %s747_s20, 4  ;;  %p672_p2 = scmp.ne.s32.totalorder %s858_s2, %s671_s25  ;;  %s41_s21 = int_to_ptr.vmem [resolvable:$true] %s40_s21 }
  0x25   :  { %p675_p3 = scmp.lt.u32.totalorder %s671_s25, %s858_s2 }
  0x27   :  { %p677_p4 = pnand %p675_p3, %p672_p2 }
  0x29   :  { %680 = shalt.err (!%p677_p4)
}
  0x2a   :  { %s681_s30 = scalar_lea.vmem %s41_s21, 8192  ;;  %p686_p6 = scmp.lt.s32.totalorder %s41_s21, %s41_s21 }
  0x2b   :  { %p682_p5 = scmp.ne.s32.totalorder %s41_s21, %s681_s30  ;;  %p687_p7 = scmp.lt.s32.totalorder %s681_s30, %s681_s30 }
  0x2d   :  { %p688_p8 = por %p687_p7, %p686_p6 }
  0x2f   :  { %p689_p9 = pnand %p688_p8, %p682_p5 }
  0x31   :  { %692 = shalt.err (!%p689_p9)
}
  0x32   :  { %s748_s0 = smov 128   ;;  %s749_s24 = smov 8  }
  0x33   :  { %46 = dma.hbm_to_vmem [thread:$0]  %s858_s2, 8192, %s41_s21, [#allocation6], %s748_s0, %s748_s0, %s749_s24  }
  0x34   :  { %s750_s9 = smov [#allocation8]   ;;  %s693_s13 = scalar_lea.hbm %s860_s4, 2048 }
  0x35   :  { %s54_s10 = sshll.u32 %s750_s9, 4  ;;  %p694_p10 = scmp.ne.s32.totalorder %s860_s4, %s693_s13  ;;  %s55_s10 = int_to_ptr.vmem [resolvable:$true] %s54_s10 }
  0x36   :  { %p697_p11 = scmp.lt.u32.totalorder %s693_s13, %s860_s4 }
  0x38   :  { %p699_p12 = pnand %p697_p11, %p694_p10 }
  0x3a   :  { %702 = shalt.err (!%p699_p12)
}
  0x3b   :  { %s703_s18 = scalar_lea.vmem %s55_s10, 2048  ;;  %p708_p0 = scmp.lt.s32.totalorder %s55_s10, %s55_s10 }
  0x3c   :  { %p704_p13 = scmp.ne.s32.totalorder %s55_s10, %s703_s18  ;;  %p709_p1 = scmp.lt.s32.totalorder %s703_s18, %s703_s18 }
  0x3e   :  { %p710_p2 = por %p709_p1, %p708_p0 }
  0x40   :  { %p711_p3 = pnand %p710_p2, %p704_p13 }
  0x42   :  { %714 = shalt.err (!%p711_p3)
}
  0x43   :  { %60 = dma.hbm_to_vmem [thread:$0]  %s860_s4, 2048, %s55_s10, [#allocation9], %s748_s0, %s748_s0, %s749_s24  }
  0x44   :  { %737 = dma.done.wait [#allocation3], 128  }
  0x45   :  { %738 = vsyncadd [#allocation3], 4294967168 }
  0x46   :  { %739 = dma.done.wait [#allocation6], 8320  }
  0x47   :  { %740 = vsyncadd [#allocation6], 4294958976 }
  0x48   :  { %741 = dma.done.wait [#allocation9], 2048  }
  0x49   :  { %742 = vsyncadd [#allocation9], 4294965248  ;;  %v96_v0 = vld [vmem:[#allocation7 + $0x80] sm:$0xff]  ;;  %v97_v1 = vld [vmem:[#allocation7 + $0x88] sm:$0xff]  ;;  %vm752_vm0 = vmmov 0   ;;  %s754_s22 = smov [#allocation10]  }
  0x4a   :  { %v80_v2 = vld [vmem:[#allocation7] sm:$0xff]  ;;  %v527_v3 = vpack.c.bf16 %v97_v1, %v96_v0  ;;  %v81_v4 = vld [vmem:[#allocation7 + $0x8] sm:$0xff]  ;;  %v98_v11 = vld [vmem:[#allocation7 + $0x90] sm:$0xff]  ;;  %s392_s23 = sshll.u32 %s754_s22, 4  ;;  %s393_s23 = int_to_ptr.vmem [resolvable:$true] %s392_s23 }
  0x4b   :  { %v128_v5 = vld [vmem:[#allocation7 + $0x180] sm:$0xff]  ;;  %v129_v6 = vld [vmem:[#allocation7 + $0x188] sm:$0xff]  ;;  %v529_v7 = vpack.c.bf16 %v81_v4, %v80_v2  ;;  %v99_v13 = vld [vmem:[#allocation7 + $0x98] sm:$0xff]  ;;  %p720_p5 = scmp.lt.s32.totalorder %s393_s23, %s393_s23 }
  0x4c   :  { %v559_v8 = vpack.c.bf16 %v129_v6, %v128_v5  ;;  %v112_v9 = vld [vmem:[#allocation7 + $0x100] sm:$0xff]  ;;  %v113_v10 = vld [vmem:[#allocation7 + $0x108] sm:$0xff]  ;;  %528 = vmatprep.subr.bf16.mxu0 %v527_v3  ;;  %v82_v14 = vld [vmem:[#allocation7 + $0x10] sm:$0xff]  ;;  %v531_v16 = vpack.c.bf16 %v99_v13, %v98_v11 }
  0x4d   :  { %v561_v12 = vpack.c.bf16 %v113_v10, %v112_v9  ;;  %v83_v15 = vld [vmem:[#allocation7 + $0x18] sm:$0xff]  ;;  %530 = vmatpush3.bf16.msra.mxu0 %v529_v7  ;;  %v130_v18 = vld [vmem:[#allocation7 + $0x190] sm:$0xff]  ;;  %v100_v23 = vld [vmem:[#allocation7 + $0xa0] sm:$0xff] }
  0x4e   :  { %560 = vmatprep.subr.bf16.mxu1 %v559_v8  ;;  %v533_v17 = vpack.c.bf16 %v83_v15, %v82_v14  ;;  %v131_v19 = vld [vmem:[#allocation7 + $0x198] sm:$0xff]  ;;  %v114_v20 = vld [vmem:[#allocation7 + $0x110] sm:$0xff]  ;;  %v101_v24 = vld [vmem:[#allocation7 + $0xa8] sm:$0xff]  ;;  %532 = vmatprep.subr.bf16.mxu0 %v531_v16 }
  0x4f   :  { %562 = vmatpush3.bf16.msra.mxu1 %v561_v12  ;;  %v563_v21 = vpack.c.bf16 %v131_v19, %v130_v18  ;;  %v115_v22 = vld [vmem:[#allocation7 + $0x118] sm:$0xff]  ;;  %v535_v26 = vpack.c.bf16 %v101_v24, %v100_v23  ;;  %v84_v27 = vld [vmem:[#allocation7 + $0x20] sm:$0xff]  ;;  %v85_v28 = vld [vmem:[#allocation7 + $0x28] sm:$0xff] }
  0x50   :  { %v565_v25 = vpack.c.bf16 %v115_v22, %v114_v20  ;;  %v132_v29 = vld [vmem:[#allocation7 + $0x1a0] sm:$0xff]  ;;  %v133_v30 = vld [vmem:[#allocation7 + $0x1a8] sm:$0xff]  ;;  %v537_v33 = vpack.c.bf16 %v85_v28, %v84_v27  ;;  %v102_v35 = vld [vmem:[#allocation7 + $0xb0] sm:$0xff] }
  0x51   :  { %564 = vmatprep.subr.bf16.mxu1 %v563_v21  ;;  %v116_v31 = vld [vmem:[#allocation7 + $0x120] sm:$0xff]  ;;  %v117_v32 = vld [vmem:[#allocation7 + $0x128] sm:$0xff]  ;;  %534 = vmatpush3.bf16.msra.mxu0 %v533_v17  ;;  %v567_v34 = vpack.c.bf16 %v133_v30, %v132_v29  ;;  %v103_v36 = vld [vmem:[#allocation7 + $0xb8] sm:$0xff] }
  0x52   :  { %v86_v37 = vld [vmem:[#allocation7 + $0x30] sm:$0xff]  ;;  %536 = vmatprep.subr.bf16.mxu0 %v535_v26  ;;  %v569_v38 = vpack.c.bf16 %v117_v32, %v116_v31  ;;  %v539_v39 = vpack.c.bf16 %v103_v36, %v102_v35  ;;  %v87_v40 = vld [vmem:[#allocation7 + $0x38] sm:$0xff]  ;;  %v104_v46 = vld [vmem:[#allocation7 + $0xc0] sm:$0xff] }
  0x53   :  { %566 = vmatpush3.bf16.msra.mxu1 %v565_v25  ;;  %v134_v41 = vld [vmem:[#allocation7 + $0x1b0] sm:$0xff]  ;;  %v135_v42 = vld [vmem:[#allocation7 + $0x1b8] sm:$0xff]  ;;  %v105_v47 = vld [vmem:[#allocation7 + $0xc8] sm:$0xff]  ;;  %v541_v48 = vpack.c.bf16 %v87_v40, %v86_v37  ;;  %v751_v40 = vmov 0.0|0.0  }
  0x54   :  { %568 = vmatprep.subr.bf16.mxu1 %v567_v34  ;;  %v571_v43 = vpack.c.bf16 %v135_v42, %v134_v41  ;;  %v118_v44 = vld [vmem:[#allocation7 + $0x130] sm:$0xff]  ;;  %v119_v45 = vld [vmem:[#allocation7 + $0x138] sm:$0xff]  ;;  %v136_v49 = vld [vmem:[#allocation7 + $0x1c0] sm:$0xff]  ;;  %v543_v52 = vpack.c.bf16 %v105_v47, %v104_v46 }
  0x55   :  { %538 = vmatpush3.bf16.msra.mxu0 %v537_v33  ;;  %v137_v50 = vld [vmem:[#allocation7 + $0x1c8] sm:$0xff]  ;;  %v573_v51 = vpack.c.bf16 %v119_v45, %v118_v44  ;;  %v88_v53 = vld [vmem:[#allocation7 + $0x40] sm:$0xff]  ;;  %v106_v58 = vld [vmem:[#allocation7 + $0xd0] sm:$0xff] }
  0x56   :  { %540 = vmatprep.subr.bf16.mxu0 %v539_v39  ;;  %v89_v54 = vld [vmem:[#allocation7 + $0x48] sm:$0xff]  ;;  %v120_v55 = vld [vmem:[#allocation7 + $0x140] sm:$0xff]  ;;  %v575_v56 = vpack.c.bf16 %v137_v50, %v136_v49  ;;  %v107_v59 = vld [vmem:[#allocation7 + $0xd8] sm:$0xff] }
  0x57   :  { %570 = vmatpush3.bf16.msra.mxu1 %v569_v38  ;;  %v121_v57 = vld [vmem:[#allocation7 + $0x148] sm:$0xff]  ;;  %v138_v60 = vld [vmem:[#allocation7 + $0x1d0] sm:$0xff]  ;;  %v139_v61 = vld [vmem:[#allocation7 + $0x1d8] sm:$0xff]  ;;  %v545_v62 = vpack.c.bf16 %v89_v54, %v88_v53  ;;  %v547_v0 = vpack.c.bf16 %v107_v59, %v106_v58 }
  0x58   :  { %572 = vmatprep.subr.bf16.mxu1 %v571_v43  ;;  %v577_v63 = vpack.c.bf16 %v121_v57, %v120_v55  ;;  %v90_v1 = vld [vmem:[#allocation7 + $0x50] sm:$0xff]  ;;  %v91_v2 = vld [vmem:[#allocation7 + $0x58] sm:$0xff]  ;;  %v579_v4 = vpack.c.bf16 %v139_v61, %v138_v60  ;;  %v108_v6 = vld [vmem:[#allocation7 + $0xe0] sm:$0xff]  ;;  %v753_v61 = vmov 0.0  }
  0x59   :  { %542 = vmatpush3.bf16.msra.mxu0 %v541_v48  ;;  %v122_v3 = vld [vmem:[#allocation7 + $0x150] sm:$0xff]  ;;  %v123_v5 = vld [vmem:[#allocation7 + $0x158] sm:$0xff]  ;;  %v109_v7 = vld [vmem:[#allocation7 + $0xe8] sm:$0xff]  ;;  %v549_v10 = vpack.c.bf16 %v91_v2, %v90_v1 }
  0x5a   :  { %544 = vmatprep.subr.bf16.mxu0 %v543_v52  ;;  %v140_v8 = vld [vmem:[#allocation7 + $0x1e0] sm:$0xff]  ;;  %v141_v9 = vld [vmem:[#allocation7 + $0x1e8] sm:$0xff]  ;;  %v581_v13 = vpack.c.bf16 %v123_v5, %v122_v3  ;;  %v551_v14 = vpack.c.bf16 %v109_v7, %v108_v6  ;;  %v76_v16 = vld [vmem:[#allocation5] sm:$0xff] }
  0x5b   :  { %574 = vmatpush3.bf16.msra.mxu1 %v573_v51  ;;  %v92_v11 = vld [vmem:[#allocation7 + $0x60] sm:$0xff]  ;;  %v93_v12 = vld [vmem:[#allocation7 + $0x68] sm:$0xff]  ;;  %v75_v17 = vld [vmem:[#allocation2] sm:$0xff]  ;;  %v583_v18 = vpack.c.bf16 %v141_v9, %v140_v8  ;;  %215 = vmatprep.mubr.f32.mxu0 %v76_v16 }
  0x5c   :  { %576 = vmatprep.subr.bf16.mxu1 %v575_v56  ;;  %v124_v15 = vld [vmem:[#allocation7 + $0x160] sm:$0xff]  ;;  %v125_v19 = vld [vmem:[#allocation7 + $0x168] sm:$0xff]  ;;  %v110_v20 = vld [vmem:[#allocation7 + $0xf0] sm:$0xff]  ;;  %v78_v22 = vsub.f32 %v75_v17, %v76_v16  ;;  %v553_v25 = vpack.c.bf16 %v93_v12, %v92_v11  ;;  %v77_v38 = vmul.f32 %v76_v16, %v75_v17 }
  0x5d   :  { %546 = vmatpush3.bf16.msra.mxu0 %v545_v62  ;;  %v111_v21 = vld [vmem:[#allocation7 + $0xf8] sm:$0xff]  ;;  %v142_v23 = vld [vmem:[#allocation7 + $0x1f0] sm:$0xff]  ;;  %v585_v27 = vpack.c.bf16 %v125_v19, %v124_v15  ;;  %v292_v36 = vld [vmem:[#allocation8] sm:$0xff] }
  0x5e   :  { %548 = vmatprep.subr.bf16.mxu0 %v547_v0  ;;  %v143_v24 = vld [vmem:[#allocation7 + $0x1f8] sm:$0xff]  ;;  %v79_v26 = vand.u32 2147483647, %v78_v22  ;;  %v555_v28 = vpack.c.bf16 %v111_v21, %v110_v20  ;;  %v94_v29 = vld [vmem:[#allocation7 + $0x70] sm:$0xff]  ;;  %v293_v37 = vld [vmem:[#allocation8 + $0x8] sm:$0xff] }
  0x5f   :  { %578 = vmatpush3.bf16.msra.mxu1 %v577_v63  ;;  %v95_v30 = vld [vmem:[#allocation7 + $0x78] sm:$0xff]  ;;  %v587_v31 = vpack.c.bf16 %v143_v24, %v142_v23  ;;  %v126_v32 = vld [vmem:[#allocation7 + $0x170] sm:$0xff]  ;;  %v592_v39 = vpack.c.bf16 %v293_v37, %v292_v36  ;;  %v296_v44 = vld [vmem:[#allocation8 + $0x20] sm:$0xff] }
  0x60   :  { %580 = vmatprep.subr.bf16.mxu1 %v579_v4  ;;  %v127_v33 = vld [vmem:[#allocation7 + $0x178] sm:$0xff]  ;;  %285 = vmatprep.mubr.f32.mxu1 %v79_v26  ;;  %v557_v34 = vpack.c.bf16 %v95_v30, %v94_v29  ;;  %v294_v41 = vld [vmem:[#allocation8 + $0x10] sm:$0xff]  ;;  %v297_v45 = vld [vmem:[#allocation8 + $0x28] sm:$0xff] }
  0x61   :  { %550 = vmatpush3.bf16.msra.mxu0 %v549_v10  ;;  %v589_v35 = vpack.c.bf16 %v127_v33, %v126_v32  ;;  %v295_v42 = vld [vmem:[#allocation8 + $0x18] sm:$0xff]  ;;  %v598_v46 = vpack.c.bf16 %v297_v45, %v296_v44  ;;  %v298_v47 = vld [vmem:[#allocation8 + $0x30] sm:$0xff]  ;;  %v300_v50 = vld [vmem:[#allocation8 + $0x40] sm:$0xff] }
  0x62   :  { %552 = vmatprep.subr.bf16.mxu0 %v551_v14  ;;  %v595_v43 = vpack.c.bf16 %v295_v42, %v294_v41  ;;  %v299_v48 = vld [vmem:[#allocation8 + $0x38] sm:$0xff]  ;;  %v301_v51 = vld [vmem:[#allocation8 + $0x48] sm:$0xff]  ;;  %v302_v53 = vld [vmem:[#allocation8 + $0x50] sm:$0xff] }
  0x63   :  { %582 = vmatpush3.bf16.msra.mxu1 %v581_v13  ;;  %v601_v49 = vpack.c.bf16 %v299_v48, %v298_v47  ;;  %v604_v52 = vpack.c.bf16 %v301_v51, %v300_v50  ;;  %v303_v54 = vld [vmem:[#allocation8 + $0x58] sm:$0xff]  ;;  %v304_v56 = vld [vmem:[#allocation8 + $0x60] sm:$0xff]  ;;  %v305_v57 = vld [vmem:[#allocation8 + $0x68] sm:$0xff] }
  0x64   :  { %584 = vmatprep.subr.bf16.mxu1 %v583_v18  ;;  %v607_v55 = vpack.c.bf16 %v303_v54, %v302_v53  ;;  %v610_v58 = vpack.c.bf16 %v305_v57, %v304_v56  ;;  %v306_v59 = vld [vmem:[#allocation8 + $0x70] sm:$0xff]  ;;  %v307_v60 = vld [vmem:[#allocation8 + $0x78] sm:$0xff] }
  0x65   :  { %554 = vmatpush3.bf16.msra.mxu0 %v553_v25  ;;  %v613_v62 = vpack.c.bf16 %v307_v60, %v306_v59  ;;  %v403_v0 = vld [vmem:[%s859_s3] ss:$0 sm:$0xff]  ;;  %s715_s3 = scalar_lea.vmem %s393_s23, 128 }
  0x66   :  { %556 = vmatprep.subr.bf16.mxu0 %v555_v28  ;;  %v404_v9 = vld [vmem:[%s861_s5] ss:$0 sm:$0xff]  ;;  %p716_p4 = scmp.ne.s32.totalorder %s393_s23, %s715_s3  ;;  %p721_p6 = scmp.lt.s32.totalorder %s715_s3, %s715_s3 }
  0x67   :  { %586 = vmatpush3.bf16.msra.mxu1 %v585_v27 }
  0x68   :  { %588 = vmatprep.subr.bf16.mxu1 %v587_v31  ;;  %p722_p7 = por %p721_p6, %p720_p5 }
  0x69   :  { %558 = vmatpush3.bf16.msra.mxu0 %v557_v34 }
  0x6a   :  { %591 = vmatprep.subr.bf16.mxu0 %v751_v40  ;;  %p723_p8 = pnand %p722_p7, %p716_p4 }
  0x6b   :  { %590 = vmatpush3.bf16.msra.mxu1 %v589_v35 }
  0x6c   :  { %216 = vmatmul.mubr.f32.vlgmr.msra.gmra.mrb[0].mxu0 %v75_v17 }
  0x6d   :  { %593 = vmatpush3.bf16.msra.mxu0 %v592_v39  ;;  %524 = vmatprep.mubr.msk.f32.mxu0 %vm752_vm0, %v753_v61 }
  0x6e   :  { %286 = vmatmul.mubr.f32.vlgmr.msra.gmra.mrb[0].mxu1 %v77_v38  ;;  %594 = vmatprep.subr.bf16.mxu0 %v751_v40 }
  0x71   :  { %596 = vmatpush3.bf16.msra.mxu0 %v595_v43 }
  0x72   :  { %597 = vmatprep.subr.bf16.mxu0 %v751_v40 }
  0x75   :  { %599 = vmatpush3.bf16.msra.mxu0 %v598_v46 }
  0x76   :  { %600 = vmatprep.subr.bf16.mxu0 %v751_v40 }
  0x79   :  { %602 = vmatpush3.bf16.msra.mxu0 %v601_v49 }
  0x7a   :  { %603 = vmatprep.subr.bf16.mxu0 %v751_v40 }
  0x7d   :  { %605 = vmatpush3.bf16.msra.mxu0 %v604_v52 }
  0x7e   :  { %606 = vmatprep.subr.bf16.mxu0 %v751_v40 }
  0x81   :  { %608 = vmatpush3.bf16.msra.mxu0 %v607_v55 }
  0x82   :  { %609 = vmatprep.subr.bf16.mxu0 %v751_v40 }
  0x85   :  { %611 = vmatpush3.bf16.msra.mxu0 %v610_v58 }
  0x86   :  { %612 = vmatprep.subr.bf16.mxu0 %v751_v40 }
  0x89   :  { %614 = vmatpush3.bf16.msra.mxu0 %v613_v62 }
 0x13f   :  { %v437_v63 = vpop.f32.mrb[0].mxu0 }
 0x140   :  { %v438_v1 = vpop.f32.mrb[1].mxu0 }
 0x141   :  { %v472_v2 = vpop.f32.mrb[0].mxu1  ;;  %v439_v3 = vadd.f32 %v438_v1, %v437_v63 }
 0x142   :  { %v473_v4 = vpop.f32.mrb[1].mxu1 }
 0x143   :  { %v474_v5 = vadd.f32 %v473_v4, %v472_v2  ;;  %v218_v6 = vadd.f32 %v439_v3, %v403_v0 }
 0x145   :  { %v288_v7 = vadd.f32 %v474_v5, %v218_v6 }
 0x147   :  { %625 = vtanh.f32 %v288_v7 }
 0x151   :  { %v626_v8 = vpop.eup %625 }
 0x152   :  { %525 = vmatmul.mubr.f32.vlgmr.msra.gmra.mrb[2].mxu0 %v626_v8 }
 0x225   :  { %v381_v10 = vpop.f32.mrb[2].mxu0 }
 0x226   :  { %v382_v11 = vadd.f32 %v404_v9, %v381_v10  ;;  %v526_v12 = vpop.f32.mrb[3].mxu0 }
 0x228   :  { %385 = vst [vmem:[#allocation10] sm:$0xff] %v382_v11 }
 0x229   :  { %726 = shalt.err (!%p723_p8)
}
 0x22a   :  { %s727_s27 = scalar_lea.hbm %s862_s6, 128 }
 0x22b   :  { %p728_p9 = scmp.ne.s32.totalorder %s862_s6, %s727_s27  ;;  %p731_p10 = scmp.lt.u32.totalorder %s727_s27, %s862_s6 }
 0x22d   :  { %p733_p11 = pnand %p731_p10, %p728_p9 }
 0x22f   :  { %736 = shalt.err (!%p733_p11)
}
 0x230   :  { %395 = dma.vmem_to_hbm [thread:$0]  %s393_s23, 128, %s862_s6, [#allocation4]  }
 0x231   :  { %743 = dma.done.wait [#allocation4], 128  }
 0x232   :  { %744 = vsyncadd [#allocation4], 4294967168 }
 0x233   :  { %399 = vsyncpa [#allocation3], 1 }
 0x234   :  { %400 = vsyncpa [#allocation6], 1 }
 0x235   :  { %401 = vsyncpa [#allocation9], 1 }
 0x236   :  { %402 = vsyncpa [#allocation4], 1 }

</bundles_post_ra>
